<compile_context>
chip_gen: v6e
topology: v6e:2x2x1
jax: 0.10.0
libtpu: 0.0.40
codegen_flags: <defaults>
</compile_context>

<pallas_src>
import functools
import math

import jax
import jax.numpy as jnp
from jax.experimental import pallas as pl
from jax.experimental.pallas import tpu as pltpu


def _round_up(x, m):
    return ((x + m - 1) // m) * m


def _pad_axis(a, axis, target):
    pad = target - a.shape[axis]
    if pad == 0:
        return a
    widths = [(0, 0)] * a.ndim
    widths[axis] = (0, pad)
    return jnp.pad(a, widths)


def _tpu_generation_params():
    """Returns (mxu_align, vmem_budget_bytes) for the attached TPU generation."""
    mxu_align = 128
    vmem_cap = 128 << 20
    try:
        kind = jax.devices()[0].device_kind.lower()
    except Exception:
        kind = ""
    if ("v6" in kind) or ("v7" in kind):
        mxu_align = 256              # v6e/v7x MXU is 256x256
    if "v7" in kind:
        vmem_cap = 64 << 20          # v7x: 64 MiB VMEM per TensorCore
    try:                             # refine if the query is available; never exceed
        vmem_cap = min(vmem_cap, int(pltpu.get_tpu_info().vmem_capacity_bytes))
    except Exception:
        pass
    # Leave headroom for compiler-internal scratch: ~48 MiB on v7x, ~96 MiB on v5e/v6e.
    vmem_budget = min((vmem_cap * 3) // 4, 100 << 20)
    return mxu_align, vmem_budget


def _select_tiles(N, d_model, d_ff, cdt_size, out_size, *, align, sublane,
                  vmem_budget, tm_max, tf_max, allow_resident=True):
    """Pick (dm_p, tm, tf, df_p). Prefers VMEM-resident weights (tf == df_p)."""
    dm_p = _round_up(d_model, align)

    def vmem_needed(tm, tf):
        return (
            2 * tm * dm_p * cdt_size      # x tile (double-buffered)
            + 2 * tm * dm_p * out_size    # out tile
            + tm * dm_p * 4               # f32 accumulator scratch
            + 2 * dm_p * tf * cdt_size    # W1 d_ff slice
            + 2 * tf * dm_p * cdt_size    # W2 d_ff slice
            + 2 * tf * 4 + 2 * dm_p * 4   # biases (f32)
        )

    tm = max(sublane, min(_round_up(tm_max, sublane), _round_up(N, sublane)))

    # 1) Resident weights: d_ff untiled -> weight block index is constant across
    #    the whole grid, so W1/W2 are DMA'd from HBM exactly once.
    df_res = _round_up(d_ff, align)
    if allow_resident:
        tm_r = tm
        while tm_r > sublane and vmem_needed(tm_r, df_res) > vmem_budget:
            tm_r = max(sublane, _round_up(tm_r // 2, sublane))
        if vmem_needed(tm_r, df_res) <= vmem_budget:
            return dm_p, tm_r, df_res, df_res

    # 2) Weights do not fit resident: tile d_ff on the inner "arbitrary" axis
    #    with minimal 128-aligned padding; keep tm as large as possible to
    #    amortize weight re-streaming (traffic ~ n_p/tm).
    tf = max(128, min(_round_up(tf_max, 128), _round_up(d_ff, 128)))
    while vmem_needed(tm, tf) > vmem_budget and (tm > sublane or tf > 128):
        if tf >= tm and tf > 128:
            tf = max(128, _round_up(tf // 2, 128))
        elif tm > sublane:
            tm = max(sublane, _round_up(tm // 2, sublane))
        else:
            break
    n_slices = math.ceil(d_ff / tf)
    tf = _round_up(math.ceil(d_ff / n_slices), 128)   # minimal padding per slice
    df_p = n_slices * tf
    return dm_p, tm, tf, df_p


def _ffn_kernel(x_ref, w1_ref, b1_ref, w2_ref, b2_ref, o_ref, acc_ref, *, nk):
    # Grid: (token tiles [parallel], d_ff slices [arbitrary, innermost]).
    # x_ref:  (tm, dm)   w1_ref: (dm, tf)   b1_ref: (1, tf)  f32
    # w2_ref: (tf, dm)   b2_ref: (1, dm) f32
    # o_ref:  (tm, dm)   acc_ref: f32 scratch (only used when nk > 1)
    k = pl.program_id(1)

    # First matmul on this d_ff slice, bias + ReLU (dropout = identity, eval).
    h = jnp.dot(x_ref[...], w1_ref[...], preferred_element_type=jnp.float32)
    h = jnp.maximum(h + b1_ref[...], 0.0)

    # Partial second matmul, f32 accumulation on the MXU.
    partial = jnp.dot(h.astype(w2_ref.dtype), w2_ref[...],
                      preferred_element_type=jnp.float32)

    if nk == 1:
        # Single d_ff slice (resident weights): skip the accumulator round-trip.
        o_ref[...] = (partial + b2_ref[...]).astype(o_ref.dtype)
    else:
        @pl.when(k == 0)
        def _():
            acc_ref[...] = partial          # direct write: no zero-init + '+='

        @pl.when(k > 0)
        def _():
            acc_ref[...] += partial

        @pl.when(k == nk - 1)
        def _():
            o_ref[...] = (acc_ref[...] + b2_ref[...]).astype(o_ref.dtype)


def feed_forward(x, w1, b1, w2, b2, *, compute_dtype=jnp.bfloat16, tm=512,
                 tf_max=2048, allow_resident=True, dropout_rate=0.1,
                 deterministic=True):
    """x: (batch, seq, d_model). Weights stored as (in, out). Returns same shape as x."""
    if (not deterministic) and dropout_rate > 0.0:
        # TODO(synk): training-mode dropout would need pltpu.prng_seed/prng_random_bits.
        raise NotImplementedError("Only eval-mode (dropout=identity) is implemented.")

    B, S, d_model = x.shape
    d_ff = w1.shape[1]
    N = B * S
    out_dtype = x.dtype

    cdt = jnp.dtype(compute_dtype)
    odt = jnp.dtype(out_dtype)
    sublane = max(8, 32 // cdt.itemsize)          # 8 for f32, 16 for bf16

    align, vmem_budget = _tpu_generation_params()

    dm_p, tm_eff, tf, df_p = _select_tiles(
        N, d_model, d_ff, cdt.itemsize, odt.itemsize,
        align=align, sublane=sublane, vmem_budget=vmem_budget,
        tm_max=tm, tf_max=tf_max, allow_resident=allow_resident)

    n_p = _round_up(N, tm_eff)
    nt = n_p // tm_eff
    nk = df_p // tf

    # --- wrapper-side layout plumbing (cheap, outside the kernel) ------------
    x2 = _pad_axis(_pad_axis(x.reshape(N, d_model).astype(cdt), 1, dm_p), 0, n_p)
    w1p = _pad_axis(_pad_axis(w1.astype(cdt), 0, dm_p), 1, df_p)
    w2p = _pad_axis(_pad_axis(w2.astype(cdt), 0, df_p), 1, dm_p)
    b1p = _pad_axis(b1.astype(jnp.float32).reshape(1, d_ff), 1, df_p)
    b2p = _pad_axis(b2.astype(jnp.float32).reshape(1, d_model), 1, dm_p)

    # --- cost estimate: per-array itemsize, actual DMA volume ----------------
    w_stream = 2 * dm_p * df_p * cdt.itemsize
    weight_traffic = w_stream if nk == 1 else nt * w_stream
    cost = pl.CostEstimate(
        flops=4 * n_p * dm_p * df_p,              # two matmuls, 2 flops/MAC
        transcendentals=0,
        bytes_accessed=(n_p * dm_p * cdt.itemsize       # x read
                        + n_p * dm_p * odt.itemsize     # out write
                        + weight_traffic
                        + (df_p + dm_p) * 4),           # f32 biases
    )

    acc_shape = (tm_eff, dm_p) if nk > 1 else (8, 128)   # dummy when unused

    out = pl.pallas_call(
        functools.partial(_ffn_kernel, nk=nk),
        out_shape=jax.ShapeDtypeStruct((n_p, dm_p), out_dtype),
        grid_spec=pltpu.PrefetchScalarGridSpec(
            num_scalar_prefetch=0,
            grid=(nt, nk),
            in_specs=[
                pl.BlockSpec((tm_eff, dm_p), lambda i, k: (i, 0)),  # x (k-invariant)
                # When nk == 1 these block indices are constant over the whole
                # grid, so the weights are DMA'd once and stay VMEM-resident.
                pl.BlockSpec((dm_p, tf), lambda i, k: (0, k)),      # W1 slice
                pl.BlockSpec((1, tf), lambda i, k: (0, k)),         # b1 slice
                pl.BlockSpec((tf, dm_p), lambda i, k: (k, 0)),      # W2 slice
                pl.BlockSpec((1, dm_p), lambda i, k: (0, 0)),       # b2 (invariant)
            ],
            out_specs=pl.BlockSpec((tm_eff, dm_p), lambda i, k: (i, 0)),
            scratch_shapes=[pltpu.VMEM(acc_shape, jnp.float32)],
        ),
        compiler_params=pltpu.CompilerParams(
            dimension_semantics=("parallel", "arbitrary"),
            vmem_limit_bytes=int(vmem_budget),
        ),
        cost_estimate=cost,
    )(x2, w1p, b1p, w2p, b2p)

    return out[:N, :d_model].reshape(B, S, d_model)


def init_params(key, d_model, d_ff, dtype=jnp.float32):
    """Deterministic init mimicking nn.Linear (uniform +/- 1/sqrt(fan_in))."""
    k1, k2, k3, k4 = jax.random.split(key, 4)
    lim1 = 1.0 / (d_model ** 0.5)
    lim2 = 1.0 / (d_ff ** 0.5)
    # Stored as (in_features, out_features) = PyTorch weight transposed.
    w1 = jax.random.uniform(k1, (d_model, d_ff), dtype, -lim1, lim1)
    b1 = jax.random.uniform(k2, (d_ff,), dtype, -lim1, lim1)
    w2 = jax.random.uniform(k3, (d_ff, d_model), dtype, -lim2, lim2)
    b2 = jax.random.uniform(k4, (d_model,), dtype, -lim2, lim2)
    return w1, b1, w2, b2


def _reference(x, w1, b1, w2, b2):
    return jnp.maximum(x @ w1 + b1, 0.0) @ w2 + b2


if __name__ == "__main__":
    key = jax.random.PRNGKey(0)

    # Case 1: small shapes consistent with the module (scaled-down d_model/d_ff).
    batch, seq, d_model, d_ff = 2, 8, 32, 128
    kx, kp, key = jax.random.split(key, 3)
    x = jax.random.normal(kx, (batch, seq, d_model), jnp.float32)
    w1, b1, w2, b2 = init_params(kp, d_model, d_ff)
    ref = _reference(x, w1, b1, w2, b2)

    # 1a) f32 MXU path (resident weights): verifies padding/tiling exactly.
    out_f32 = jax.block_until_ready(
        feed_forward(x, w1, b1, w2, b2, compute_dtype=jnp.float32))
    assert out_f32.shape == (batch, seq, d_model)
    assert jnp.allclose(out_f32, ref, atol=1e-4, rtol=1e-4)

    # 1b) default bf16 MXU path: bf16-input-level tolerance.
    out_bf16 = jax.block_until_ready(feed_forward(x, w1, b1, w2, b2))
    assert out_bf16.shape == (batch, seq, d_model)
    assert jnp.allclose(out_bf16, ref, atol=5e-2, rtol=5e-2)

    # Case 2: deliberately unaligned shapes exercising the padding path.
    batch2, seq2, d_model2, d_ff2 = 2, 7, 48, 300
    kx2, kp2, key = jax.random.split(key, 3)
    x2 = jax.random.normal(kx2, (batch2, seq2, d_model2), jnp.float32)
    w1b, b1b, w2b, b2b = init_params(kp2, d_model2, d_ff2)
    ref2 = _reference(x2, w1b, b1b, w2b, b2b)

    # 2a) resident bf16 path on unaligned shapes.
    out2 = jax.block_until_ready(feed_forward(x2, w1b, b1b, w2b, b2b))
    assert out2.shape == (batch2, seq2, d_model2)
    assert jnp.allclose(out2, ref2, atol=5e-2, rtol=5e-2)

    # 2b) force the tiled-d_ff accumulation path (non-resident weights), f32.
    out2_tiled = jax.block_until_ready(
        feed_forward(x2, w1b, b1b, w2b, b2b, compute_dtype=jnp.float32,
                     allow_resident=False, tf_max=128))
    assert jnp.allclose(out2_tiled, ref2, atol=1e-4, rtol=1e-4)

    print("KERNEL_OK")
</pallas_src>

<mosaic_0001>
module attributes {stable_mosaic.version = 11 : i64} {
  func.func @_ffn_kernel(%arg0: i32, %arg1: i32, %arg2: memref<16x128xf32, #tpu.memory_space<vmem>>, %arg3: memref<128x128xf32, #tpu.memory_space<vmem>>, %arg4: memref<1x128xf32, #tpu.memory_space<vmem>>, %arg5: memref<128x128xf32, #tpu.memory_space<vmem>>, %arg6: memref<1x128xf32, #tpu.memory_space<vmem>>, %arg7: memref<16x128xf32, #tpu.memory_space<vmem>>, %arg8: memref<8x128xf32, #tpu.memory_space<vmem>>) attributes {dimension_semantics = [#tpu.dimension_semantics<parallel>, #tpu.dimension_semantics<arbitrary>], iteration_bounds = array<i64: 1, 1>, scalar_prefetch = 0 : i64, scratch_operands = 1 : i64, tpu.core_type = #tpu.core_type<tc>, window_params = [{transform_indices = @transform_0, window_bounds = array<i64: 16, 128>}, {transform_indices = @transform_1, window_bounds = array<i64: 128, 128>}, {transform_indices = @transform_2, window_bounds = array<i64: 1, 128>}, {transform_indices = @transform_3, window_bounds = array<i64: 128, 128>}, {pipeline_mode = #tpu.pipeline_mode<synchronous>, transform_indices = @transform_4, window_bounds = array<i64: 1, 128>}, {transform_indices = @transform_5, window_bounds = array<i64: 16, 128>}]} {
    %c0 = arith.constant 0 : index
    %c0_0 = arith.constant 0 : index
    %0 = vector.load %arg2[%c0, %c0_0] : memref<16x128xf32, #tpu.memory_space<vmem>>, vector<16x128xf32>
    %c0_1 = arith.constant 0 : index
    %c0_2 = arith.constant 0 : index
    %1 = vector.load %arg3[%c0_1, %c0_2] : memref<128x128xf32, #tpu.memory_space<vmem>>, vector<128x128xf32>
    %cst = arith.constant dense<0.000000e+00> : vector<16x128xf32>
    %2 = tpu.matmul %0, %1, %cst {dimension_numbers = #tpu.dot_dimension_numbers<[1], [0], [0], [1], [0, 0, 1, 1], [], []>} : vector<16x128xf32>, vector<128x128xf32>, vector<16x128xf32> -> vector<16x128xf32>
    %c0_3 = arith.constant 0 : index
    %c0_4 = arith.constant 0 : index
    %3 = vector.load %arg4[%c0_3, %c0_4] : memref<1x128xf32, #tpu.memory_space<vmem>>, vector<1x128xf32>
    %4 = vector.broadcast %3 : vector<1x128xf32> to vector<16x128xf32>
    %5 = arith.addf %2, %4 : vector<16x128xf32>
    %cst_5 = arith.constant 0.000000e+00 : f32
    %6 = vector.broadcast %cst_5 : f32 to vector<16x128xf32>
    %7 = arith.maximumf %5, %6 : vector<16x128xf32>
    %c0_6 = arith.constant 0 : index
    %c0_7 = arith.constant 0 : index
    %8 = vector.load %arg5[%c0_6, %c0_7] : memref<128x128xf32, #tpu.memory_space<vmem>>, vector<128x128xf32>
    %cst_8 = arith.constant dense<0.000000e+00> : vector<16x128xf32>
    %9 = tpu.matmul %7, %8, %cst_8 {dimension_numbers = #tpu.dot_dimension_numbers<[1], [0], [0], [1], [0, 0, 1, 1], [], []>} : vector<16x128xf32>, vector<128x128xf32>, vector<16x128xf32> -> vector<16x128xf32>
    %c0_9 = arith.constant 0 : index
    %c0_10 = arith.constant 0 : index
    %10 = vector.load %arg6[%c0_9, %c0_10] : memref<1x128xf32, #tpu.memory_space<vmem>>, vector<1x128xf32>
    %11 = vector.broadcast %10 : vector<1x128xf32> to vector<16x128xf32>
    %12 = arith.addf %9, %11 : vector<16x128xf32>
    %c0_11 = arith.constant 0 : index
    %c0_12 = arith.constant 0 : index
    %13 = vector.load %arg7[%c0_11, %c0_12] : memref<16x128xf32, #tpu.memory_space<vmem>>, vector<16x128xf32>
    tpu.vector_store %arg7[%c0_11, %c0_12], %12 {strides = array<i32>} : memref<16x128xf32, #tpu.memory_space<vmem>>, vector<16x128xf32>,
    return
  }
  func.func @transform_0(%arg0: i32, %arg1: i32) -> (i32, i32) {
    %c0_i32 = arith.constant 0 : i32
    %c0_i32_0 = arith.constant 0 : i32
    return %arg0, %c0_i32 : i32, i32
  }
  func.func @transform_1(%arg0: i32, %arg1: i32) -> (i32, i32) {
    %c0_i32 = arith.constant 0 : i32
    %c0_i32_0 = arith.constant 0 : i32
    return %c0_i32, %arg1 : i32, i32
  }
  func.func @transform_2(%arg0: i32, %arg1: i32) -> (i32, i32) {
    %c0_i32 = arith.constant 0 : i32
    %c0_i32_0 = arith.constant 0 : i32
    return %c0_i32, %arg1 : i32, i32
  }
  func.func @transform_3(%arg0: i32, %arg1: i32) -> (i32, i32) {
    %c0_i32 = arith.constant 0 : i32
    %c0_i32_0 = arith.constant 0 : i32
    return %arg1, %c0_i32 : i32, i32
  }
  func.func @transform_4(%arg0: i32, %arg1: i32) -> (i32, i32) {
    %c0_i32 = arith.constant 0 : i32
    %c0_i32_0 = arith.constant 0 : i32
    %c0_i32_1 = arith.constant 0 : i32
    return %c0_i32, %c0_i32_0 : i32, i32
  }
  func.func @transform_5(%arg0: i32, %arg1: i32) -> (i32, i32) {
    %c0_i32 = arith.constant 0 : i32
    %c0_i32_0 = arith.constant 0 : i32
    return %arg0, %c0_i32 : i32, i32
  }
}

</mosaic_0001>

<bundles_post_ra>
// kernel: tpu_custom_call.1
= control target key start
LH: loop header
LB: loop body
LE: loop exit
PB: predicated region body
PF: predicated region fallthrough
CT: control target
= control target key end

     0   :  { %10 = vsyncpa [#allocation4], 0  ;;  %s548_s0 = inlined_call_operand.hbm [shape: f32[16,128], index: 0, kind: input, shape index: {}]   ;;  %s549_s1 = inlined_call_operand.hbm [shape: f32[128,128], index: 1, kind: input, shape index: {}]   ;;  %s550_s2 = inlined_call_operand.vmem [shape: f32[1,128], index: 2, kind: input, shape index: {}]   ;;  %s551_s3 = inlined_call_operand.hbm [shape: f32[128,128], index: 3, kind: input, shape index: {}]   ;;  %s552_s4 = inlined_call_operand.vmem [shape: f32[1,128], index: 4, kind: input, shape index: {}]   ;;  %s553_s5 = inlined_call_operand.hbm [shape: f32[16,128], index: 5, kind: output, shape index: {}]  }
   0x1   :  { %11 = vsyncpa [#allocation7], 0 }
   0x2   :  { %12 = vsyncpa [#allocation5], 0  ;;  %s482_s18 = smov [#allocation6]   ;;  %s483_s20 = smov [#allocation3]  }
   0x3   :  { %s30_s19 = sshll.u32 %s482_s18, 4  ;;  %s18_s21 = sshll.u32 %s483_s20, 4  ;;  %s31_s19 = int_to_ptr.vmem [resolvable:$true] %s30_s19  ;;  %s19_s21 = int_to_ptr.vmem [resolvable:$true] %s18_s21 }
   0x4   :  { %s404_s22 = scalar_lea.vmem %s31_s19, 2048  ;;  %p409_p1 = scmp.lt.s32.totalorder %s31_s19, %s31_s19 }
   0x5   :  { %p405_p0 = scmp.ne.s32.totalorder %s31_s19, %s404_s22  ;;  %p410_p2 = scmp.lt.s32.totalorder %s404_s22, %s404_s22 }
   0x7   :  { %p411_p3 = por %p410_p2, %p409_p1 }
   0x9   :  { %p412_p4 = pnand %p411_p3, %p405_p0 }
   0xb   :  { %415 = shalt.err (!%p412_p4)
}
   0xc   :  { %s484_s23 = smov 128   ;;  %s485_s24 = smov 8  }
   0xd   :  { %36 = dma.hbm_to_vmem [thread:$0]  %s549_s1, 2048, %s31_s19, [#allocation7], %s484_s23, %s484_s23, %s485_s24  }
   0xe   :  { %s424_s27 = scalar_lea.vmem %s19_s21, 256  ;;  %p429_p6 = scmp.lt.s32.totalorder %s19_s21, %s19_s21 }
   0xf   :  { %p425_p5 = scmp.ne.s32.totalorder %s19_s21, %s424_s27  ;;  %p430_p7 = scmp.lt.s32.totalorder %s424_s27, %s424_s27 }
  0x11   :  { %p431_p8 = por %p430_p7, %p429_p6 }
  0x13   :  { %p432_p9 = pnand %p431_p8, %p425_p5 }
  0x15   :  { %435 = shalt.err (!%p432_p9)
}
  0x16   :  { %24 = dma.hbm_to_vmem [thread:$0]  %s548_s0, 256, %s19_s21, [#allocation4], %s484_s23, %s484_s23, %s485_s24  }
  0x17   :  { %s486_s30 = smov [#allocation8]  }
  0x18   :  { %s44_s6 = sshll.u32 %s486_s30, 4  ;;  %s45_s6 = int_to_ptr.vmem [resolvable:$true] %s44_s6 }
  0x19   :  { %s444_s7 = scalar_lea.vmem %s45_s6, 2048  ;;  %p449_p11 = scmp.lt.s32.totalorder %s45_s6, %s45_s6 }
  0x1a   :  { %p445_p10 = scmp.ne.s32.totalorder %s45_s6, %s444_s7  ;;  %p450_p12 = scmp.lt.s32.totalorder %s444_s7, %s444_s7 }
  0x1c   :  { %p451_p13 = por %p450_p12, %p449_p11 }
  0x1e   :  { %p452_p0 = pnand %p451_p13, %p445_p10 }
  0x20   :  { %455 = shalt.err (!%p452_p0)
}
  0x21   :  { %50 = dma.hbm_to_vmem [thread:$0]  %s551_s3, 2048, %s45_s6, [#allocation7], %s484_s23, %s484_s23, %s485_s24  }
  0x22   :  { %476 = dma.done.wait [#allocation4], 256  }
  0x23   :  { %477 = vsyncadd [#allocation4], 4294967040 }
  0x24   :  { %478 = dma.done.wait [#allocation7], 4096  }
  0x25   :  { %479 = vsyncadd [#allocation7], 4294963200  ;;  %v79_v0 = vld [vmem:[#allocation6 + $0x78] sm:$0xff]  ;;  %v78_v1 = vld [vmem:[#allocation6 + $0x70] sm:$0xff]  ;;  %s487_s11 = smov [#allocation9]  }
  0x26   :  { %320 = vmatprep.subr.mxu0 %v79_v0  ;;  %v77_v2 = vld [vmem:[#allocation6 + $0x68] sm:$0xff]  ;;  %v76_v3 = vld [vmem:[#allocation6 + $0x60] sm:$0xff]  ;;  %v62_v4 = vld [vmem:[#allocation3] sm:$0xff]  ;;  %s269_s12 = sshll.u32 %s487_s11, 4  ;;  %s270_s12 = int_to_ptr.vmem [resolvable:$true] %s269_s12 }
  0x27   :  { %321 = vmatpush3.msra.mxu0 %v79_v0  ;;  %v75_v5 = vld [vmem:[#allocation6 + $0x58] sm:$0xff]  ;;  %352 = vmatprep.mubr.f32.mxu0 %v62_v4  ;;  %v178_v7 = vld [vmem:[#allocation8 + $0x70] sm:$0xff]  ;;  %v177_v9 = vld [vmem:[#allocation8 + $0x68] sm:$0xff]  ;;  %p461_p2 = scmp.lt.s32.totalorder %s270_s12, %s270_s12 }
  0x28   :  { %322 = vmatprep.subr.mxu0 %v78_v1  ;;  %v179_v6 = vld [vmem:[#allocation8 + $0x78] sm:$0xff]  ;;  %v74_v8 = vld [vmem:[#allocation6 + $0x50] sm:$0xff]  ;;  %v73_v10 = vld [vmem:[#allocation6 + $0x48] sm:$0xff] }
  0x29   :  { %323 = vmatpush3.msra.mxu0 %v78_v1  ;;  %355 = vmatprep.subr.mxu1 %v179_v6  ;;  %v176_v11 = vld [vmem:[#allocation8 + $0x60] sm:$0xff]  ;;  %v175_v13 = vld [vmem:[#allocation8 + $0x58] sm:$0xff]  ;;  %v174_v15 = vld [vmem:[#allocation8 + $0x50] sm:$0xff] }
  0x2a   :  { %324 = vmatprep.subr.mxu0 %v77_v2  ;;  %356 = vmatpush3.msra.mxu1 %v179_v6  ;;  %v72_v12 = vld [vmem:[#allocation6 + $0x40] sm:$0xff]  ;;  %v71_v14 = vld [vmem:[#allocation6 + $0x38] sm:$0xff]  ;;  %v70_v16 = vld [vmem:[#allocation6 + $0x30] sm:$0xff] }
  0x2b   :  { %325 = vmatpush3.msra.mxu0 %v77_v2  ;;  %357 = vmatprep.subr.mxu1 %v178_v7  ;;  %v173_v17 = vld [vmem:[#allocation8 + $0x48] sm:$0xff]  ;;  %v172_v19 = vld [vmem:[#allocation8 + $0x40] sm:$0xff]  ;;  %v171_v21 = vld [vmem:[#allocation8 + $0x38] sm:$0xff] }
  0x2c   :  { %326 = vmatprep.subr.mxu0 %v76_v3  ;;  %358 = vmatpush3.msra.mxu1 %v178_v7  ;;  %v69_v18 = vld [vmem:[#allocation6 + $0x28] sm:$0xff]  ;;  %v68_v20 = vld [vmem:[#allocation6 + $0x20] sm:$0xff]  ;;  %v67_v22 = vld [vmem:[#allocation6 + $0x18] sm:$0xff] }
  0x2d   :  { %327 = vmatpush3.msra.mxu0 %v76_v3  ;;  %359 = vmatprep.subr.mxu1 %v177_v9  ;;  %v170_v23 = vld [vmem:[#allocation8 + $0x30] sm:$0xff]  ;;  %v169_v25 = vld [vmem:[#allocation8 + $0x28] sm:$0xff]  ;;  %v168_v27 = vld [vmem:[#allocation8 + $0x20] sm:$0xff] }
  0x2e   :  { %328 = vmatprep.subr.mxu0 %v75_v5  ;;  %360 = vmatpush3.msra.mxu1 %v177_v9  ;;  %v66_v24 = vld [vmem:[#allocation6 + $0x10] sm:$0xff]  ;;  %v65_v26 = vld [vmem:[#allocation6 + $0x8] sm:$0xff]  ;;  %v64_v28 = vld [vmem:[#allocation6] sm:$0xff] }
  0x2f   :  { %329 = vmatpush3.msra.mxu0 %v75_v5  ;;  %361 = vmatprep.subr.mxu1 %v176_v11  ;;  %v63_v29 = vld [vmem:[#allocation3 + $0x8] sm:$0xff]  ;;  %v166_v31 = vld [vmem:[#allocation8 + $0x10] sm:$0xff]  ;;  %v165_v32 = vld [vmem:[#allocation8 + $0x8] sm:$0xff] }
  0x30   :  { %330 = vmatprep.subr.mxu0 %v74_v8  ;;  %362 = vmatpush3.msra.mxu1 %v176_v11  ;;  %v167_v30 = vld [vmem:[#allocation8 + $0x18] sm:$0xff]  ;;  %v164_v33 = vld [vmem:[#allocation8] sm:$0xff]  ;;  %v282_v34 = vld [vmem:[%s550_s2] ss:$0 sm:$0xff]  ;;  %s456_s2 = scalar_lea.vmem %s270_s12, 256 }
  0x31   :  { %331 = vmatpush3.msra.mxu0 %v74_v8  ;;  %363 = vmatprep.subr.mxu1 %v175_v13  ;;  %v283_v41 = vld [vmem:[%s552_s4] ss:$0 sm:$0xff]  ;;  %p457_p1 = scmp.ne.s32.totalorder %s270_s12, %s456_s2  ;;  %p462_p3 = scmp.lt.s32.totalorder %s456_s2, %s456_s2 }
  0x32   :  { %332 = vmatprep.subr.mxu0 %v73_v10  ;;  %364 = vmatpush3.msra.mxu1 %v175_v13 }
  0x33   :  { %333 = vmatpush3.msra.mxu0 %v73_v10  ;;  %365 = vmatprep.subr.mxu1 %v174_v15  ;;  %p463_p4 = por %p462_p3, %p461_p2 }
  0x34   :  { %334 = vmatprep.subr.mxu0 %v72_v12  ;;  %366 = vmatpush3.msra.mxu1 %v174_v15 }
  0x35   :  { %335 = vmatpush3.msra.mxu0 %v72_v12  ;;  %367 = vmatprep.subr.mxu1 %v173_v17  ;;  %p464_p5 = pnand %p463_p4, %p457_p1 }
  0x36   :  { %336 = vmatprep.subr.mxu0 %v71_v14  ;;  %368 = vmatpush3.msra.mxu1 %v173_v17 }
  0x37   :  { %337 = vmatpush3.msra.mxu0 %v71_v14  ;;  %369 = vmatprep.subr.mxu1 %v172_v19 }
  0x38   :  { %338 = vmatprep.subr.mxu0 %v70_v16  ;;  %370 = vmatpush3.msra.mxu1 %v172_v19 }
  0x39   :  { %339 = vmatpush3.msra.mxu0 %v70_v16  ;;  %371 = vmatprep.subr.mxu1 %v171_v21 }
  0x3a   :  { %340 = vmatprep.subr.mxu0 %v69_v18  ;;  %372 = vmatpush3.msra.mxu1 %v171_v21 }
  0x3b   :  { %341 = vmatpush3.msra.mxu0 %v69_v18  ;;  %373 = vmatprep.subr.mxu1 %v170_v23 }
  0x3c   :  { %342 = vmatprep.subr.mxu0 %v68_v20  ;;  %374 = vmatpush3.msra.mxu1 %v170_v23 }
  0x3d   :  { %343 = vmatpush3.msra.mxu0 %v68_v20  ;;  %375 = vmatprep.subr.mxu1 %v169_v25 }
  0x3e   :  { %344 = vmatprep.subr.mxu0 %v67_v22  ;;  %376 = vmatpush3.msra.mxu1 %v169_v25 }
  0x3f   :  { %345 = vmatpush3.msra.mxu0 %v67_v22  ;;  %377 = vmatprep.subr.mxu1 %v168_v27 }
  0x40   :  { %346 = vmatprep.subr.mxu0 %v66_v24  ;;  %378 = vmatpush3.msra.mxu1 %v168_v27 }
  0x41   :  { %347 = vmatpush3.msra.mxu0 %v66_v24  ;;  %379 = vmatprep.subr.mxu1 %v167_v30 }
  0x42   :  { %348 = vmatprep.subr.mxu0 %v65_v26  ;;  %380 = vmatpush3.msra.mxu1 %v167_v30 }
  0x43   :  { %349 = vmatpush3.msra.mxu0 %v65_v26  ;;  %381 = vmatprep.subr.mxu1 %v166_v31 }
  0x44   :  { %350 = vmatprep.subr.mxu0 %v64_v28  ;;  %382 = vmatpush3.msra.mxu1 %v166_v31 }
  0x45   :  { %351 = vmatpush3.msra.mxu0 %v64_v28  ;;  %383 = vmatprep.subr.mxu1 %v165_v32 }
  0x46   :  { %353 = vmatmul.mubr.f32.vlgmr.msra.gmra.mxu0 %v63_v29  ;;  %384 = vmatpush3.msra.mxu1 %v165_v32 }
  0x47   :  { %385 = vmatprep.subr.mxu1 %v164_v33 }
  0x48   :  { %386 = vmatpush3.msra.mxu1 %v164_v33 }
 0x106   :  { %v354_v35 = vpop.f32.mrf.mxu0 }
 0x107   :  { %v159_v36 = vadd.f32 %v354_v35, %v282_v34 }
 0x108   :  { %v153_v37 = vpop.f32.mrf.mxu0 }
 0x109   :  { %v154_v38 = vadd.f32 %v282_v34, %v153_v37  ;;  %v163_v40 = vmax.f32 %v159_v36, 0.0 }
 0x10b   :  { %v162_v39 = vmax.f32 %v154_v38, 0.0 }
 0x10d   :  { %387 = vmatprep.mubr.f32.mxu1 %v162_v39 }
 0x10e   :  { %388 = vmatmul.mubr.f32.vlgmr.msra.gmra.mxu1 %v163_v40 }
 0x1ce   :  { %v389_v42 = vpop.f32.mrf.mxu1 }
 0x1cf   :  { %v259_v43 = vadd.f32 %v389_v42, %v283_v41 }
 0x1d0   :  { %v253_v44 = vpop.f32.mrf.mxu1 }
 0x1d1   :  { %263 = vst [vmem:[#allocation9 + $0x8] sm:$0xff] %v259_v43  ;;  %v254_v45 = vadd.f32 %v283_v41, %v253_v44 }
 0x1d3   :  { %262 = vst [vmem:[#allocation9] sm:$0xff] %v254_v45 }
 0x1d4   :  { %467 = shalt.err (!%p464_p5)
}
 0x1d5   :  { %275 = dma.vmem_to_hbm [thread:$0]  %s270_s12, 256, %s553_s5, [#allocation5], %s484_s23, %s484_s23, %s485_s24  }
 0x1d6   :  { %480 = dma.done.wait [#allocation5], 256  }
 0x1d7   :  { %481 = vsyncadd [#allocation5], 4294967040 }
 0x1d8   :  { %279 = vsyncpa [#allocation4], 1 }
 0x1d9   :  { %280 = vsyncpa [#allocation7], 1 }
 0x1da   :  { %281 = vsyncpa [#allocation5], 1 }

</bundles_post_ra>
